<compile_context>
chip_gen: v7x
topology: tpu7x:2x2x1
jax: 0.10.0
libtpu: 0.0.40
codegen_flags: <defaults>
</compile_context>

<pallas_src>
import jax
import jax.numpy as jnp
from jax.experimental import pallas as pl
from jax.experimental.pallas import tpu as pltpu


def _round_up(a, b):
    return (a + b - 1) // b * b


def _vmem_capacity_bytes():
    """Physical VMEM of the attached TPU; conservative fallback if unknown."""
    try:
        info = pltpu.get_tpu_info()
        cap = getattr(info, "vmem_capacity_bytes", None)
        if cap:
            return int(cap)
    except Exception:
        pass
    return 64 << 20  # v7x per-TC size: the smallest across v5e/v6e/v7x


def _make_eigen_kernel(T, r_valid):
    """Build the per-block kernel.

    Block layout:
      x_ref, t_ref : (1, 12, T, 128) -- channels lead; HW spans (sublane, lane).
      out_ref      : (1, 1, 1, 128)  -- lane 0 = loss_1 partial, lane 1 = loss_2 partial.

    `r_valid` is the true number of HW rows. The grid uses cdiv(r_valid, T), so
    the last block may run past the array; those tail rows hold unspecified data
    and are masked before the reduction.
    """
    needs_mask = (r_valid % T) != 0

    def kernel(x_ref, t_ref, out_ref):
        def ch(ref, c):
            return ref[0, c].astype(jnp.float32)          # (T, 128) dense slab

        # loss_1: per-pixel squared diff accumulated over channels 0..2.
        d = ch(x_ref, 0) - ch(t_ref, 0)
        acc1 = d * d
        for c in (1, 2):
            d = ch(x_ref, c) - ch(t_ref, c)
            acc1 = acc1 + d * d

        # loss_2: per-pixel (||x_triplet|| - ||t_triplet||)^2 over the 3 triplets.
        def norm_sq_diff(base):
            xa, xb, xc = ch(x_ref, base), ch(x_ref, base + 1), ch(x_ref, base + 2)
            ta, tb, tc = ch(t_ref, base), ch(t_ref, base + 1), ch(t_ref, base + 2)
            nx = jnp.sqrt(xa * xa + xb * xb + xc * xc)
            nt = jnp.sqrt(ta * ta + tb * tb + tc * tc)
            dn = nx - nt
            return dn * dn

        acc2 = norm_sq_diff(3)
        for i in (1, 2):
            acc2 = acc2 + norm_sq_diff(3 + 3 * i)

        if needs_mask:
            # Partial tail block: rows >= rows_left were never DMA'd -> mask them.
            rows_left = r_valid - pl.program_id(1) * T
            row = jax.lax.broadcasted_iota(jnp.int32, (T, 128), 0)
            keep = row < rows_left
            acc1 = jnp.where(keep, acc1, 0.0)
            acc2 = jnp.where(keep, acc2, 0.0)

        s1 = jnp.sum(acc1)                                 # one reduce per loss
        s2 = jnp.sum(acc2)
        lane = jax.lax.broadcasted_iota(jnp.int32, (1, 1, 1, 128), 3)
        out_ref[...] = (jnp.where(lane == 0, s1, jnp.float32(0.0))
                        + jnp.where(lane == 1, s2, jnp.float32(0.0)))

    return kernel


def eigen_loss(x, t, *, max_block_bytes=None):
    """EigenLoss forward. x, t: (N, C>=12, H, W). Returns scalar f32 loss."""
    assert x.shape == t.shape, "input/target shape mismatch"
    N, C, H, W = x.shape
    assert C >= 12, "EigenLoss needs at least 12 channels"
    HW = H * W
    count1 = float(N * 3 * HW)   # loss_1 divisor (mean over N, 3, H, W)
    count2 = float(N * HW)       # loss_2 divisor (mean over N, H, W)

    itemsize = jnp.dtype(x.dtype).itemsize
    tile = max(8, 32 // itemsize)        # dtype-aware sublane tile: 8 f32 / 16 bf16 / 32 int8
    r_raw = pl.cdiv(HW, 128)             # HW laid out as (rows, 128 lanes)

    vmem_cap = _vmem_capacity_bytes()
    if max_block_bytes is None:
        # 2 inputs x 2 pipeline buffers x block must fit comfortably in physical VMEM
        # on every generation (v7x: 64 MiB per TC). ~8 MiB blocks are the v6e sweet spot.
        max_block_bytes = max(2 << 20, min(8 << 20, vmem_cap // 10))

    row_bytes = 12 * 128 * itemsize
    t_rows_max = max(tile, (max_block_bytes // row_bytes) // tile * tile)

    if r_raw <= t_rows_max:
        T = r_raw                        # single row-block: full extent (no alignment needed)
    else:
        T = t_rows_max                   # tile-aligned; tail block masked in-kernel
    NR = pl.cdiv(r_raw, T)

    # Guarantee >= 2 independent grid steps so both TensorCores get work (v7x dual-TC).
    if N * NR == 1 and r_raw >= 2 * tile:
        T = _round_up(pl.cdiv(r_raw, 2), tile)
        NR = pl.cdiv(r_raw, T)

    # Layout: (N, C, HW) -> (N, C, r_raw, 128).
    # Zero-copy reshape when HW % 128 == 0; otherwise pad only the lane tail
    # (zero padding is exact: (0-0)^2 = 0 and (|0|-|0|)^2 = 0; divisors use true HW).
    x3 = x.reshape(N, C, HW)
    t3 = t.reshape(N, C, HW)
    lane_pad = r_raw * 128 - HW
    if lane_pad > 0:
        if C > 12:                       # never pad channels the kernel won't read
            x3, t3 = x3[:, :12], t3[:, :12]
        x3 = jnp.pad(x3, ((0, 0), (0, 0), (0, lane_pad)))
        t3 = jnp.pad(t3, ((0, 0), (0, 0), (0, lane_pad)))
    c_k = x3.shape[1]
    x4 = x3.reshape(N, c_k, r_raw, 128)
    t4 = t3.reshape(N, c_k, r_raw, 128)

    # VMEM limit from the actual live footprint (2 inputs x 2 buffers + small output),
    # capped below the physical VMEM of the attached generation.
    block_bytes = 12 * T * 128 * itemsize
    vmem_limit = 4 * block_bytes + (2 << 20)
    vmem_limit = int(min(max(vmem_limit, 8 << 20), max(vmem_cap - (4 << 20), 8 << 20)))

    kernel = _make_eigen_kernel(T, r_raw)

    partials = pl.pallas_call(
        kernel,
        out_shape=jax.ShapeDtypeStruct((N, NR, 1, 128), jnp.float32),
        grid_spec=pltpu.PrefetchScalarGridSpec(
            num_scalar_prefetch=0,
            grid=(N, NR),
            in_specs=[
                pl.BlockSpec((1, 12, T, 128), lambda b, r: (b, 0, r, 0)),
                pl.BlockSpec((1, 12, T, 128), lambda b, r: (b, 0, r, 0)),
            ],
            out_specs=pl.BlockSpec((1, 1, 1, 128), lambda b, r: (b, r, 0, 0)),
        ),
        compiler_params=pltpu.CompilerParams(
            dimension_semantics=("parallel", "parallel"),
            vmem_limit_bytes=vmem_limit,
        ),
    )(x4, t4)

    s1 = jnp.sum(partials[:, :, 0, 0])
    s2 = jnp.sum(partials[:, :, 0, 1])
    return s1 / count1 + s2 / count2


def eigen_loss_ref(x, t):
    """Pure-JAX reference mirroring the PyTorch module (math in f32)."""
    x = x.astype(jnp.float32)
    t = t.astype(jnp.float32)
    loss_1 = jnp.mean((x[:, :3] - t[:, :3]) ** 2)
    s = 0.0
    for i in range(3):
        nx = jnp.linalg.norm(x[:, 3 + 3 * i:6 + 3 * i], axis=1)
        nt = jnp.linalg.norm(t[:, 3 + 3 * i:6 + 3 * i], axis=1)
        s = s + (nx - nt) ** 2
    loss_2 = jnp.mean(s)
    return loss_1 + loss_2


if __name__ == "__main__":
    key = jax.random.PRNGKey(0)
    cases = [
        # (shape,               dtype,         kwargs,                                tol)
        ((2, 12, 16, 16),       jnp.float32,   {},                                    1e-5),  # zero-copy path
        ((2, 12, 7, 9),         jnp.float32,   {},                                    1e-5),  # ragged HW: minimal lane pad
        ((1, 12, 20, 128),      jnp.float32,   {"max_block_bytes": 12 * 8 * 128 * 4}, 1e-5),  # partial tail block (masked)
        ((2, 12, 16, 16),       jnp.bfloat16,  {},                                    1e-3),  # packed dtype path
    ]
    for shape, dtype, kw, tol in cases:
        k1, k2, key = jax.random.split(key, 3)
        xs = jax.random.normal(k1, shape, dtype=jnp.float32).astype(dtype)
        ts = jax.random.normal(k2, shape, dtype=jnp.float32).astype(dtype)
        out = jax.block_until_ready(eigen_loss(xs, ts, **kw))
        ref = jax.block_until_ready(eigen_loss_ref(xs, ts))
        assert jnp.allclose(out, ref, rtol=tol, atol=tol), (shape, str(dtype), float(out), float(ref))
    print("KERNEL_OK")
</pallas_src>

<mosaic_0001>
module attributes {stable_mosaic.version = 11 : i64} {
  func.func @kernel(%arg0: i32, %arg1: i32, %arg2: memref<1x12x2x128xf32, #tpu.memory_space<vmem>>, %arg3: memref<1x12x2x128xf32, #tpu.memory_space<vmem>>, %arg4: memref<1x1x1x128xf32, #tpu.memory_space<vmem>>) attributes {dimension_semantics = [#tpu.dimension_semantics<parallel>, #tpu.dimension_semantics<parallel>], iteration_bounds = array<i64: 2, 1>, scalar_prefetch = 0 : i64, scratch_operands = 0 : i64, tpu.core_type = #tpu.core_type<tc>, window_params = [{transform_indices = @transform_0, window_bounds = array<i64: 1, 12, 2, 128>}, {transform_indices = @transform_1, window_bounds = array<i64: 1, 12, 2, 128>}, {transform_indices = @transform_2, window_bounds = array<i64: 1, 1, 1, 128>}]} {
    %c0 = arith.constant 0 : index
    %c0_0 = arith.constant 0 : index
    %c0_1 = arith.constant 0 : index
    %c0_2 = arith.constant 0 : index
    %0 = vector.load %arg2[%c0, %c0_0, %c0_1, %c0_2] : memref<1x12x2x128xf32, #tpu.memory_space<vmem>>, vector<1x1x2x128xf32>
    %1 = vector.shape_cast %0 : vector<1x1x2x128xf32> to vector<2x128xf32>
    %c0_3 = arith.constant 0 : index
    %c0_4 = arith.constant 0 : index
    %c0_5 = arith.constant 0 : index
    %c0_6 = arith.constant 0 : index
    %2 = vector.load %arg3[%c0_3, %c0_4, %c0_5, %c0_6] : memref<1x12x2x128xf32, #tpu.memory_space<vmem>>, vector<1x1x2x128xf32>
    %3 = vector.shape_cast %2 : vector<1x1x2x128xf32> to vector<2x128xf32>
    %4 = arith.subf %1, %3 : vector<2x128xf32>
    %5 = arith.mulf %4, %4 : vector<2x128xf32>
    %c0_7 = arith.constant 0 : index
    %c1 = arith.constant 1 : index
    %c0_8 = arith.constant 0 : index
    %c0_9 = arith.constant 0 : index
    %6 = vector.load %arg2[%c0_7, %c1, %c0_8, %c0_9] : memref<1x12x2x128xf32, #tpu.memory_space<vmem>>, vector<1x1x2x128xf32>
    %7 = vector.shape_cast %6 : vector<1x1x2x128xf32> to vector<2x128xf32>
    %c0_10 = arith.constant 0 : index
    %c1_11 = arith.constant 1 : index
    %c0_12 = arith.constant 0 : index
    %c0_13 = arith.constant 0 : index
    %8 = vector.load %arg3[%c0_10, %c1_11, %c0_12, %c0_13] : memref<1x12x2x128xf32, #tpu.memory_space<vmem>>, vector<1x1x2x128xf32>
    %9 = vector.shape_cast %8 : vector<1x1x2x128xf32> to vector<2x128xf32>
    %10 = arith.subf %7, %9 : vector<2x128xf32>
    %11 = arith.mulf %10, %10 : vector<2x128xf32>
    %12 = arith.addf %5, %11 : vector<2x128xf32>
    %c0_14 = arith.constant 0 : index
    %c2 = arith.constant 2 : index
    %c0_15 = arith.constant 0 : index
    %c0_16 = arith.constant 0 : index
    %13 = vector.load %arg2[%c0_14, %c2, %c0_15, %c0_16] : memref<1x12x2x128xf32, #tpu.memory_space<vmem>>, vector<1x1x2x128xf32>
    %14 = vector.shape_cast %13 : vector<1x1x2x128xf32> to vector<2x128xf32>
    %c0_17 = arith.constant 0 : index
    %c2_18 = arith.constant 2 : index
    %c0_19 = arith.constant 0 : index
    %c0_20 = arith.constant 0 : index
    %15 = vector.load %arg3[%c0_17, %c2_18, %c0_19, %c0_20] : memref<1x12x2x128xf32, #tpu.memory_space<vmem>>, vector<1x1x2x128xf32>
    %16 = vector.shape_cast %15 : vector<1x1x2x128xf32> to vector<2x128xf32>
    %17 = arith.subf %14, %16 : vector<2x128xf32>
    %18 = arith.mulf %17, %17 : vector<2x128xf32>
    %19 = arith.addf %12, %18 : vector<2x128xf32>
    %c0_21 = arith.constant 0 : index
    %c3 = arith.constant 3 : index
    %c0_22 = arith.constant 0 : index
    %c0_23 = arith.constant 0 : index
    %20 = vector.load %arg2[%c0_21, %c3, %c0_22, %c0_23] : memref<1x12x2x128xf32, #tpu.memory_space<vmem>>, vector<1x1x2x128xf32>
    %21 = vector.shape_cast %20 : vector<1x1x2x128xf32> to vector<2x128xf32>
    %c0_24 = arith.constant 0 : index
    %c4 = arith.constant 4 : index
    %c0_25 = arith.constant 0 : index
    %c0_26 = arith.constant 0 : index
    %22 = vector.load %arg2[%c0_24, %c4, %c0_25, %c0_26] : memref<1x12x2x128xf32, #tpu.memory_space<vmem>>, vector<1x1x2x128xf32>
    %23 = vector.shape_cast %22 : vector<1x1x2x128xf32> to vector<2x128xf32>
    %c0_27 = arith.constant 0 : index
    %c5 = arith.constant 5 : index
    %c0_28 = arith.constant 0 : index
    %c0_29 = arith.constant 0 : index
    %24 = vector.load %arg2[%c0_27, %c5, %c0_28, %c0_29] : memref<1x12x2x128xf32, #tpu.memory_space<vmem>>, vector<1x1x2x128xf32>
    %25 = vector.shape_cast %24 : vector<1x1x2x128xf32> to vector<2x128xf32>
    %c0_30 = arith.constant 0 : index
    %c3_31 = arith.constant 3 : index
    %c0_32 = arith.constant 0 : index
    %c0_33 = arith.constant 0 : index
    %26 = vector.load %arg3[%c0_30, %c3_31, %c0_32, %c0_33] : memref<1x12x2x128xf32, #tpu.memory_space<vmem>>, vector<1x1x2x128xf32>
    %27 = vector.shape_cast %26 : vector<1x1x2x128xf32> to vector<2x128xf32>
    %c0_34 = arith.constant 0 : index
    %c4_35 = arith.constant 4 : index
    %c0_36 = arith.constant 0 : index
    %c0_37 = arith.constant 0 : index
    %28 = vector.load %arg3[%c0_34, %c4_35, %c0_36, %c0_37] : memref<1x12x2x128xf32, #tpu.memory_space<vmem>>, vector<1x1x2x128xf32>
    %29 = vector.shape_cast %28 : vector<1x1x2x128xf32> to vector<2x128xf32>
    %c0_38 = arith.constant 0 : index
    %c5_39 = arith.constant 5 : index
    %c0_40 = arith.constant 0 : index
    %c0_41 = arith.constant 0 : index
    %30 = vector.load %arg3[%c0_38, %c5_39, %c0_40, %c0_41] : memref<1x12x2x128xf32, #tpu.memory_space<vmem>>, vector<1x1x2x128xf32>
    %31 = vector.shape_cast %30 : vector<1x1x2x128xf32> to vector<2x128xf32>
    %32 = arith.mulf %21, %21 : vector<2x128xf32>
    %33 = arith.mulf %23, %23 : vector<2x128xf32>
    %34 = arith.addf %32, %33 : vector<2x128xf32>
    %35 = arith.mulf %25, %25 : vector<2x128xf32>
    %36 = arith.addf %34, %35 : vector<2x128xf32>
    %37 = math.sqrt %36 : vector<2x128xf32>
    %38 = arith.mulf %27, %27 : vector<2x128xf32>
    %39 = arith.mulf %29, %29 : vector<2x128xf32>
    %40 = arith.addf %38, %39 : vector<2x128xf32>
    %41 = arith.mulf %31, %31 : vector<2x128xf32>
    %42 = arith.addf %40, %41 : vector<2x128xf32>
    %43 = math.sqrt %42 : vector<2x128xf32>
    %44 = arith.subf %37, %43 : vector<2x128xf32>
    %45 = arith.mulf %44, %44 : vector<2x128xf32>
    %c0_42 = arith.constant 0 : index
    %c6 = arith.constant 6 : index
    %c0_43 = arith.constant 0 : index
    %c0_44 = arith.constant 0 : index
    %46 = vector.load %arg2[%c0_42, %c6, %c0_43, %c0_44] : memref<1x12x2x128xf32, #tpu.memory_space<vmem>>, vector<1x1x2x128xf32>
    %47 = vector.shape_cast %46 : vector<1x1x2x128xf32> to vector<2x128xf32>
    %c0_45 = arith.constant 0 : index
    %c7 = arith.constant 7 : index
    %c0_46 = arith.constant 0 : index
    %c0_47 = arith.constant 0 : index
    %48 = vector.load %arg2[%c0_45, %c7, %c0_46, %c0_47] : memref<1x12x2x128xf32, #tpu.memory_space<vmem>>, vector<1x1x2x128xf32>
    %49 = vector.shape_cast %48 : vector<1x1x2x128xf32> to vector<2x128xf32>
    %c0_48 = arith.constant 0 : index
    %c8 = arith.constant 8 : index
    %c0_49 = arith.constant 0 : index
    %c0_50 = arith.constant 0 : index
    %50 = vector.load %arg2[%c0_48, %c8, %c0_49, %c0_50] : memref<1x12x2x128xf32, #tpu.memory_space<vmem>>, vector<1x1x2x128xf32>
    %51 = vector.shape_cast %50 : vector<1x1x2x128xf32> to vector<2x128xf32>
    %c0_51 = arith.constant 0 : index
    %c6_52 = arith.constant 6 : index
    %c0_53 = arith.constant 0 : index
    %c0_54 = arith.constant 0 : index
    %52 = vector.load %arg3[%c0_51, %c6_52, %c0_53, %c0_54] : memref<1x12x2x128xf32, #tpu.memory_space<vmem>>, vector<1x1x2x128xf32>
    %53 = vector.shape_cast %52 : vector<1x1x2x128xf32> to vector<2x128xf32>
    %c0_55 = arith.constant 0 : index
    %c7_56 = arith.constant 7 : index
    %c0_57 = arith.constant 0 : index
    %c0_58 = arith.constant 0 : index
    %54 = vector.load %arg3[%c0_55, %c7_56, %c0_57, %c0_58] : memref<1x12x2x128xf32, #tpu.memory_space<vmem>>, vector<1x1x2x128xf32>
    %55 = vector.shape_cast %54 : vector<1x1x2x128xf32> to vector<2x128xf32>
    %c0_59 = arith.constant 0 : index
    %c8_60 = arith.constant 8 : index
    %c0_61 = arith.constant 0 : index
    %c0_62 = arith.constant 0 : index
    %56 = vector.load %arg3[%c0_59, %c8_60, %c0_61, %c0_62] : memref<1x12x2x128xf32, #tpu.memory_space<vmem>>, vector<1x1x2x128xf32>
    %57 = vector.shape_cast %56 : vector<1x1x2x128xf32> to vector<2x128xf32>
    %58 = arith.mulf %47, %47 : vector<2x128xf32>
    %59 = arith.mulf %49, %49 : vector<2x128xf32>
    %60 = arith.addf %58, %59 : vector<2x128xf32>
    %61 = arith.mulf %51, %51 : vector<2x128xf32>
    %62 = arith.addf %60, %61 : vector<2x128xf32>
    %63 = math.sqrt %62 : vector<2x128xf32>
    %64 = arith.mulf %53, %53 : vector<2x128xf32>
    %65 = arith.mulf %55, %55 : vector<2x128xf32>
    %66 = arith.addf %64, %65 : vector<2x128xf32>
    %67 = arith.mulf %57, %57 : vector<2x128xf32>
    %68 = arith.addf %66, %67 : vector<2x128xf32>
    %69 = math.sqrt %68 : vector<2x128xf32>
    %70 = arith.subf %63, %69 : vector<2x128xf32>
    %71 = arith.mulf %70, %70 : vector<2x128xf32>
    %72 = arith.addf %45, %71 : vector<2x128xf32>
    %c0_63 = arith.constant 0 : index
    %c9 = arith.constant 9 : index
    %c0_64 = arith.constant 0 : index
    %c0_65 = arith.constant 0 : index
    %73 = vector.load %arg2[%c0_63, %c9, %c0_64, %c0_65] : memref<1x12x2x128xf32, #tpu.memory_space<vmem>>, vector<1x1x2x128xf32>
    %74 = vector.shape_cast %73 : vector<1x1x2x128xf32> to vector<2x128xf32>
    %c0_66 = arith.constant 0 : index
    %c10 = arith.constant 10 : index
    %c0_67 = arith.constant 0 : index
    %c0_68 = arith.constant 0 : index
    %75 = vector.load %arg2[%c0_66, %c10, %c0_67, %c0_68] : memref<1x12x2x128xf32, #tpu.memory_space<vmem>>, vector<1x1x2x128xf32>
    %76 = vector.shape_cast %75 : vector<1x1x2x128xf32> to vector<2x128xf32>
    %c0_69 = arith.constant 0 : index
    %c11 = arith.constant 11 : index
    %c0_70 = arith.constant 0 : index
    %c0_71 = arith.constant 0 : index
    %77 = vector.load %arg2[%c0_69, %c11, %c0_70, %c0_71] : memref<1x12x2x128xf32, #tpu.memory_space<vmem>>, vector<1x1x2x128xf32>
    %78 = vector.shape_cast %77 : vector<1x1x2x128xf32> to vector<2x128xf32>
    %c0_72 = arith.constant 0 : index
    %c9_73 = arith.constant 9 : index
    %c0_74 = arith.constant 0 : index
    %c0_75 = arith.constant 0 : index
    %79 = vector.load %arg3[%c0_72, %c9_73, %c0_74, %c0_75] : memref<1x12x2x128xf32, #tpu.memory_space<vmem>>, vector<1x1x2x128xf32>
    %80 = vector.shape_cast %79 : vector<1x1x2x128xf32> to vector<2x128xf32>
    %c0_76 = arith.constant 0 : index
    %c10_77 = arith.constant 10 : index
    %c0_78 = arith.constant 0 : index
    %c0_79 = arith.constant 0 : index
    %81 = vector.load %arg3[%c0_76, %c10_77, %c0_78, %c0_79] : memref<1x12x2x128xf32, #tpu.memory_space<vmem>>, vector<1x1x2x128xf32>
    %82 = vector.shape_cast %81 : vector<1x1x2x128xf32> to vector<2x128xf32>
    %c0_80 = arith.constant 0 : index
    %c11_81 = arith.constant 11 : index
    %c0_82 = arith.constant 0 : index
    %c0_83 = arith.constant 0 : index
    %83 = vector.load %arg3[%c0_80, %c11_81, %c0_82, %c0_83] : memref<1x12x2x128xf32, #tpu.memory_space<vmem>>, vector<1x1x2x128xf32>
    %84 = vector.shape_cast %83 : vector<1x1x2x128xf32> to vector<2x128xf32>
    %85 = arith.mulf %74, %74 : vector<2x128xf32>
    %86 = arith.mulf %76, %76 : vector<2x128xf32>
    %87 = arith.addf %85, %86 : vector<2x128xf32>
    %88 = arith.mulf %78, %78 : vector<2x128xf32>
    %89 = arith.addf %87, %88 : vector<2x128xf32>
    %90 = math.sqrt %89 : vector<2x128xf32>
    %91 = arith.mulf %80, %80 : vector<2x128xf32>
    %92 = arith.mulf %82, %82 : vector<2x128xf32>
    %93 = arith.addf %91, %92 : vector<2x128xf32>
    %94 = arith.mulf %84, %84 : vector<2x128xf32>
    %95 = arith.addf %93, %94 : vector<2x128xf32>
    %96 = math.sqrt %95 : vector<2x128xf32>
    %97 = arith.subf %90, %96 : vector<2x128xf32>
    %98 = arith.mulf %97, %97 : vector<2x128xf32>
    %99 = arith.addf %72, %98 : vector<2x128xf32>
    %100 = vector.shape_cast %19 : vector<2x128xf32> to vector<1x2x128xf32>
    %cst = arith.constant dense<0.000000e+00> : vector<1xf32>
    %101 = vector.multi_reduction <add>, %100, %cst [1, 2] : vector<1x2x128xf32> to vector<1xf32>
    %102 = vector.shape_cast %101 : vector<1xf32> to vector<1x1x1xf32>
    %103 = vector.extract %102[0, 0, 0] : f32 from vector<1x1x1xf32>
    %104 = vector.shape_cast %99 : vector<2x128xf32> to vector<1x2x128xf32>
    %cst_84 = arith.constant dense<0.000000e+00> : vector<1xf32>
    %105 = vector.multi_reduction <add>, %104, %cst_84 [1, 2] : vector<1x2x128xf32> to vector<1xf32>
    %106 = vector.shape_cast %105 : vector<1xf32> to vector<1x1x1xf32>
    %107 = vector.extract %106[0, 0, 0] : f32 from vector<1x1x1xf32>
    %108 = tpu.iota {dimensions = array<i32: 3>} : vector<1x1x1x128xi32>
    %c0_i32 = arith.constant 0 : i32
    %109 = vector.broadcast %c0_i32 : i32 to vector<1x1x1x128xi32>
    %110 = arith.cmpi eq, %108, %109 : vector<1x1x1x128xi32>
    %cst_85 = arith.constant 0.000000e+00 : f32
    %111 = vector.broadcast %103 : f32 to vector<1x1x1x128xf32>
    %112 = vector.broadcast %cst_85 : f32 to vector<1x1x1x128xf32>
    %113 = arith.select %110, %111, %112 : vector<1x1x1x128xi1>, vector<1x1x1x128xf32>
    %c1_i32 = arith.constant 1 : i32
    %114 = vector.broadcast %c1_i32 : i32 to vector<1x1x1x128xi32>
    %115 = arith.cmpi eq, %108, %114 : vector<1x1x1x128xi32>
    %cst_86 = arith.constant 0.000000e+00 : f32
    %116 = vector.broadcast %107 : f32 to vector<1x1x1x128xf32>
    %117 = vector.broadcast %cst_86 : f32 to vector<1x1x1x128xf32>
    %118 = arith.select %115, %116, %117 : vector<1x1x1x128xi1>, vector<1x1x1x128xf32>
    %119 = arith.addf %113, %118 : vector<1x1x1x128xf32>
    %c0_87 = arith.constant 0 : index
    %c0_88 = arith.constant 0 : index
    %c0_89 = arith.constant 0 : index
    %c0_90 = arith.constant 0 : index
    %120 = vector.load %arg4[%c0_87, %c0_88, %c0_89, %c0_90] : memref<1x1x1x128xf32, #tpu.memory_space<vmem>>, vector<1x1x1x128xf32>
    tpu.vector_store %arg4[%c0_87, %c0_88, %c0_89, %c0_90], %119 {strides = array<i32>} : memref<1x1x1x128xf32, #tpu.memory_space<vmem>>, vector<1x1x1x128xf32>,
    return
  }
  func.func @transform_0(%arg0: i32, %arg1: i32) -> (i32, i32, i32, i32) {
    %c0_i32 = arith.constant 0 : i32
    %c0_i32_0 = arith.constant 0 : i32
    %c0_i32_1 = arith.constant 0 : i32
    return %arg0, %c0_i32, %arg1, %c0_i32_0 : i32, i32, i32, i32
  }
  func.func @transform_1(%arg0: i32, %arg1: i32) -> (i32, i32, i32, i32) {
    %c0_i32 = arith.constant 0 : i32
    %c0_i32_0 = arith.constant 0 : i32
    %c0_i32_1 = arith.constant 0 : i32
    return %arg0, %c0_i32, %arg1, %c0_i32_0 : i32, i32, i32, i32
  }
  func.func @transform_2(%arg0: i32, %arg1: i32) -> (i32, i32, i32, i32) {
    %c0_i32 = arith.constant 0 : i32
    %c0_i32_0 = arith.constant 0 : i32
    %c0_i32_1 = arith.constant 0 : i32
    return %arg0, %arg1, %c0_i32, %c0_i32_0 : i32, i32, i32, i32
  }
}

</mosaic_0001>

<bundles_post_ra>
// kernel: tpu_custom_call.1
= control target key start
LH: loop header
LB: loop body
LE: loop exit
PB: predicated region body
PF: predicated region fallthrough
CT: control target
= control target key end

     0   :  { %7 = vsyncpa [#allocation3], 0  ;;  %s1057_s0 = inlined_call_operand.hbm [shape: f32[2,12,2,128], index: 0, kind: input, shape index: {}]   ;;  %s1058_s1 = inlined_call_operand.hbm [shape: f32[2,12,2,128], index: 1, kind: input, shape index: {}]   ;;  %s1059_s2 = inlined_call_operand.hbm [shape: f32[2,1,1,128], index: 2, kind: output, shape index: {}]  }
   0x1   :  { %9 = vsyncpa [#allocation3 + $0x1], 0 }
   0x2   :  { %10 = vsyncpa [#allocation6], 0 }
   0x3   :  { %12 = vsyncpa [#allocation6 + $0x1], 0 }
   0x4   :  { %13 = vsyncpa [#allocation4], 0 }
   0x5   :  { %15 = vsyncpa [#allocation4 + $0x1], 0  ;;  %s792_s9 = smov 0   ;;  %s794_s10 = smov 0  }
   0x6   :  { %s796_s11 = smov 0   ;;  %s798_s12 = smov 0  }
   0x7   :  { %s800_s13 = smov 0   ;;  %s802_s14 = smov 0  }
   0x8 LB: > { %s502_s15 = sadd.s32 4294967295, %s770_s14   ;;  %s503_s16 = sadd.s32 4294967294, %s770_s14   ;;  %s770_s14 = sphi %s802_s14, %s21_s14   ;;  %s766_s13 = sphi %s800_s13, %s1077_s13   ;;  %s762_s12 = sphi %s798_s12, %s1076_s12   ;;  %s758_s11 = sphi %s796_s11, %s1075_s11   ;;  %s754_s10 = sphi %s794_s10, %s1074_s10   ;;  %s750_s9 = sphi %s792_s9, %s1073_s9  }
   0x9   : > { %s33_s17 = sadd.s32 1, %s766_s13  ;;  %s42_s18 = sadd.s32 1, %s758_s11 }
   0xa   : > { %p35_p0 = scmp.ge.s32.totalorder %s33_s17, 2  ;;  %p49_p1 = scmp.ne.s32.totalorder %s758_s11, %s754_s10 }
   0xb   : > { %p50_p2 = scmp.eq.s32.totalorder %s770_s14, 0  ;;  %p55_p3 = scmp.ne.s32.totalorder %s754_s10, %s750_s9 }
   0xc   : > { %s1079_s17 = smov (%p35_p0, %s33_s17), 0  ;;  %p56_p5 = scmp.eq.s32.totalorder %s502_s15, 0 }
   0xd   : > { %p833_p4 = por %p50_p2, %p49_p1  ;;  %s37_s20 = ssub.s32 %s766_s13, %s1079_s17 }
   0xe   : > { %p109_p6 = scmp.eq.s32.totalorder %s502_s15, 1  ;;  %p40_p7 = scmp.eq.s32.totalorder %s37_s20, 0 }
   0xf   : > { %p839_p8 = por %p56_p5, %p55_p3  ;;  %p115_p10 = scmp.eq.s32.totalorder %s503_s16, 1 }
  0x10   : > { %p843_p9 = por %p109_p6, %p49_p1  ;;  %p560_p13 = scmp.lt.s32.totalorder %s770_s14, 2 }
  0x11   : > { %s1063_s21 = scalar_select %p839_p8, 1, 0 }
  0x12   : > { %s1064_s22 = scalar_select %p843_p9, 1, 0 }
  0x13   : > { %s848_s23 = scalar_select %p40_p7, %s758_s11, %s42_s18  }
  0x14   : > { %p850_p11 = por %p115_p10, %p55_p3  ;;  %s857_s25 = sand.u32 1, %s758_s11  }
  0x15   : > { %s534_s26 = smul.u32 24, %s857_s25  ;;  %p863_p0 = pnand %p560_p13, %p833_p4 }
  0x16   : > { %s1065_s24 = scalar_select %p850_p11, 1, 0 }
  0x17   : > { %s535_s27 = smul.u32 384, %s766_s13  ;;  %s139_s4 = scalar_lea.vmem [#allocation2], %s534_s26 }
  0x18   : > { %s147_s5 = sshll.u32 %s139_s4, 4  ;;  %s136_s6 = scalar_lea.sflag [#allocation3], %s857_s25  ;;  %s876_s5 = int_to_ptr.vmem [resolvable:$true] %s147_s5 }
  0x19   : > { %s872_s3 = scalar_lea.hbm %s1057_s0, %s535_s27  ;;  %p626_p3 = pneg %p863_p0 }
  0x1a   : > { %s624_s7 = scalar_lea.hbm %s872_s3, 384  ;;  %s629_s16 = scalar_lea.hbm %s1057_s0, 768 }
  0x1b   : > { %p625_p2 = scmp.ne.s32.totalorder %s872_s3, %s624_s7  ;;  %p630_p6 = scmp.lt.u32.totalorder %s872_s3, %s1057_s0 }
  0x1c   : > { %p631_p7 = scmp.lt.u32.totalorder %s629_s16, %s624_s7  ;;  %p633_p13 = scmp.lt.u32.totalorder %s624_s7, %s872_s3 }
  0x1d   : > { %p627_p4 = pnand %p626_p3, %p625_p2 }
  0x1e   : > { %p632_p10 = por %p631_p7, %p630_p6 }
  0x1f   : > { %p628_p5 = pneg %p627_p4 }
  0x20   : > { %p634_p12 = por %p633_p13, %p632_p10 }
  0x22   : > { %p635_p1 = pnand %p634_p12, %p628_p5 }
  0x24   : > { %638 = shalt.err (!%p635_p1)
}
  0x25   : > { %s639_s20 = scalar_lea.vmem %s876_s5, 384  ;;  %s772_s29 = smov [#allocation2]  }
  0x26   : > { %p640_p2 = scmp.ne.s32.totalorder %s876_s5, %s639_s20  ;;  %s644_s30 = sshll.u32 %s772_s29, 4  ;;  %s645_s30 = int_to_ptr.vmem [resolvable:$false] %s644_s30 }
  0x27   : > { %s646_s4 = scalar_lea.vmem %s645_s30, 768  ;;  %p647_p9 = scmp.lt.s32.totalorder %s876_s5, %s645_s30 }
  0x28   : > { %p642_p4 = pnand %p640_p2, %p626_p3  ;;  %p648_p6 = scmp.lt.s32.totalorder %s646_s4, %s639_s20 }
  0x2a   : > { %p643_p11 = pneg %p642_p4  ;;  %p649_p7 = por %p648_p6, %p647_p9 }
  0x2c   : > { %p650_p10 = pnand %p649_p7, %p643_p11 }
  0x2e   : > { %653 = shalt.err (!%p650_p10)
}
  0x2f   : > { %s773_s7 = smov 32   ;;  %s774_s8 = smov 2  }
  0x30   : > { %552 = dma.hbm_to_vmem [thread:$0]  (!%p863_p0), %s872_s3, 384, %s876_s5, %s136_s6, %s773_s7, %s773_s7, %s774_s8  }
  0x31   : > { %p177_p9 = scmp.lt.s32.totalorder %s770_s14, 3  ;;  %s916_s18 = scalar_lea.hbm %s1058_s1, %s535_s27 }
  0x32   : > { %p1067_p11 = scmp.ge.s32.totalorder %s770_s14, 1  ;;  %s161_s20 = scalar_lea.vmem [#allocation5], %s534_s26 }
  0x33   : > { %s169_s29 = sshll.u32 %s161_s20, 4  ;;  %s158_s3 = scalar_lea.sflag [#allocation6], %s857_s25  ;;  %s926_s29 = int_to_ptr.vmem [resolvable:$true] %s169_s29 }
  0x34   : > { %p920_p12 = pnand %p1067_p11, %p177_p9  ;;  %s654_s5 = scalar_lea.hbm %s916_s18, 384 }
  0x35   : > { %p655_p1 = scmp.ne.s32.totalorder %s916_s18, %s654_s5  ;;  %s659_s30 = scalar_lea.hbm %s1058_s1, 768 }
  0x36   : > { %p660_p2 = scmp.lt.u32.totalorder %s916_s18, %s1058_s1  ;;  %p661_p4 = scmp.lt.u32.totalorder %s659_s30, %s654_s5 }
  0x37   : > { %p657_p5 = pnand %p655_p1, %p626_p3  ;;  %p663_p7 = scmp.lt.u32.totalorder %s654_s5, %s916_s18 }
  0x38   : > { %p662_p6 = por %p661_p4, %p660_p2 }
  0x39   : > { %p658_p13 = pneg %p657_p5 }
  0x3a   : > { %p664_p10 = por %p663_p7, %p662_p6 }
  0x3c   : > { %p665_p9 = pnand %p664_p10, %p658_p13 }
  0x3e   : > { %668 = shalt.err (!%p665_p9)
}
  0x3f   : > { %s669_s26 = scalar_lea.vmem %s926_s29, 384  ;;  %s775_s16 = smov [#allocation5]  }
  0x40   : > { %p670_p11 = scmp.ne.s32.totalorder %s926_s29, %s669_s26  ;;  %s674_s20 = sshll.u32 %s775_s16, 4  ;;  %s675_s20 = int_to_ptr.vmem [resolvable:$false] %s674_s20 }
  0x41   : > { %s676_s27 = scalar_lea.vmem %s675_s20, 768  ;;  %p677_p8 = scmp.lt.s32.totalorder %s926_s29, %s675_s20 }
  0x42   : > { %p672_p1 = pnand %p670_p11, %p626_p3  ;;  %p678_p2 = scmp.lt.s32.totalorder %s676_s27, %s669_s26 }
  0x44   : > { %p673_p5 = pneg %p672_p1  ;;  %p679_p4 = por %p678_p2, %p677_p8 }
  0x46   : > { %p680_p6 = pnand %p679_p4, %p673_p5 }
  0x48   : > { %683 = shalt.err (!%p680_p6)
}
  0x49   : > { %555 = dma.hbm_to_vmem [thread:$0]  (!%p863_p0), %s916_s18, 384, %s926_s29, %s158_s3, %s773_s7, %s773_s7, %s774_s8  }
  0x4a   : > { %181 = sbr.rel (%p920_p12) target bundleno = 345 (0x159), region = 28  ;;  %s960_s5 = sand.u32 (!%p920_p12), 1, %s754_s10  }
  0x4b   : > { %s538_s6 = smul.u32 (!%p920_p12), 24, %s960_s5  ;;  %s184_s30 = scalar_lea.sflag (!%p920_p12), [#allocation3], %s960_s5 }
  0x4c   : > { %p1069_p8 = scmp.ne.s32.totalorder (!%p920_p12), %s1063_s21, 0 }
  0x4d   : > { %s964_s28 = scalar_lea.vmem (!%p920_p12), [#allocation2], %s538_s6 }
  0x51   : > { %737 = dma.done.wait (%p1069_p8), %s184_s30, 384  }
  0x52   : > { %739 = vsyncadd (%p1069_p8), %s184_s30, 4294966912  ;;  %s193_s25 = scalar_lea.sflag [#allocation6], %s960_s5  ;;  %s971_s7 = scalar_lea.vmem [#allocation5], %s538_s6 }
  0x53   : > { %741 = dma.done.wait (%p1069_p8), %s193_s25, 384  }
  0x54   : > { %743 = vsyncadd (%p1069_p8), %s193_s25, 4294966912  ;;  %v221_v0 = vld [vmem:[%s964_s28] sm:$0x3]  ;;  %v222_v1 = vld [vmem:[%s971_s7] sm:$0x3]  ;;  %vm355_vm0 = vcmask 1041408  }
  0x55   : > { %v509_v2 = vld [vmem:[%s964_s28 + $0x2] sm:$0x3]  ;;  %v223_v3 = vsub.f32 %v221_v0, %v222_v1  ;;  %v510_v4 = vld [vmem:[%s971_s7 + $0x2] sm:$0x3]  ;;  %v511_v5 = vld [vmem:[%s964_s28 + $0x4] sm:$0x3] }
  0x56   : > { %v512_v6 = vld [vmem:[%s971_s7 + $0x4] sm:$0x3]  ;;  %v229_v7 = vsub.f32 %v509_v2, %v510_v4  ;;  %v513_v9 = vld [vmem:[%s964_s28 + $0x6] sm:$0x3]  ;;  %v514_v10 = vld [vmem:[%s964_s28 + $0x8] sm:$0x3] }
  0x57   : > { %v236_v8 = vsub.f32 %v511_v5, %v512_v6  ;;  %v515_v11 = vld [vmem:[%s964_s28 + $0xa] sm:$0x3]  ;;  %v224_v12 = vmul.f32 %v223_v3, %v223_v3  ;;  %v516_v13 = vld [vmem:[%s971_s7 + $0x6] sm:$0x3]  ;;  %v517_v14 = vld [vmem:[%s971_s7 + $0x8] sm:$0x3]  ;;  %v251_v16 = vmul.f32 %v513_v9, %v513_v9  ;;  %v252_v17 = vmul.f32 %v514_v10, %v514_v10 }
  0x58   : > { %v518_v15 = vld [vmem:[%s971_s7 + $0xa] sm:$0x3]  ;;  %v254_v18 = vmul.f32 %v515_v11, %v515_v11  ;;  %v230_v19 = vmul.f32 %v229_v7, %v229_v7  ;;  %v263_v21 = vmul.f32 %v516_v13, %v516_v13  ;;  %v264_v22 = vmul.f32 %v517_v14, %v517_v14  ;;  %v519_v23 = vld [vmem:[%s964_s28 + $0xc] sm:$0x3]  ;;  %v520_v24 = vld [vmem:[%s964_s28 + $0xe] sm:$0x3] }
  0x59   : > { %v237_v20 = vmul.f32 %v236_v8, %v236_v8  ;;  %v521_v25 = vld [vmem:[%s964_s28 + $0x10] sm:$0x3]  ;;  %v253_v26 = vadd.f32 %v252_v17, %v251_v16  ;;  %v266_v27 = vmul.f32 %v518_v15, %v518_v15  ;;  %v522_v28 = vld [vmem:[%s971_s7 + $0xc] sm:$0x3]  ;;  %v523_v29 = vld [vmem:[%s971_s7 + $0xe] sm:$0x3]  ;;  %v289_v30 = vmul.f32 %v519_v23, %v519_v23 }
  0x5a   : > { %v290_v31 = vmul.f32 %v520_v24, %v520_v24  ;;  %v231_v32 = vadd.f32 %v230_v19, %v224_v12  ;;  %v265_v33 = vadd.f32 %v264_v22, %v263_v21  ;;  %v292_v34 = vmul.f32 %v521_v25, %v521_v25  ;;  %v525_v35 = vld [vmem:[%s964_s28 + $0x12] sm:$0x3]  ;;  %v526_v36 = vld [vmem:[%s964_s28 + $0x14] sm:$0x3]  ;;  %v524_v38 = vld [vmem:[%s971_s7 + $0x10] sm:$0x3] }
  0x5b   : > { %v255_v37 = vadd.f32 %v254_v18, %v253_v26  ;;  %v301_v40 = vmul.f32 %v522_v28, %v522_v28  ;;  %v302_v41 = vmul.f32 %v523_v29, %v523_v29  ;;  %v328_v44 = vmul.f32 %v525_v35, %v525_v35  ;;  %v527_v46 = vld [vmem:[%s964_s28 + $0x16] sm:$0x3]  ;;  %v528_v47 = vld [vmem:[%s971_s7 + $0x12] sm:$0x3]  ;;  %v529_v48 = vld [vmem:[%s971_s7 + $0x14] sm:$0x3] }
  0x5c   : > { %v291_v39 = vadd.f32 %v290_v31, %v289_v30  ;;  %v238_v42 = vadd.f32 %v237_v20, %v231_v32  ;;  %v267_v43 = vadd.f32 %v266_v27, %v265_v33  ;;  %v329_v45 = vmul.f32 %v526_v36, %v526_v36  ;;  %v530_v53 = vld [vmem:[%s971_s7 + $0x16] sm:$0x3]  ;;  %s531_s8 = sshll.u32 %s762_s12, 4  ;;  %s220_s19 = scalar_lea.vmem [#allocation7], %s960_s5 }
  0x5d   : > { %612 = vrsqrt.f32 %v255_v37  ;;  %v304_v50 = vmul.f32 %v524_v38, %v524_v38  ;;  %v303_v52 = vadd.f32 %v302_v41, %v301_v40  ;;  %v331_v55 = vmul.f32 %v527_v46, %v527_v46  ;;  %s400_s29 = sshll.u32 %s220_s19, 4  ;;  %s1008_s15 = scalar_lea.hbm %s1059_s2, %s531_s8  ;;  %s1010_s29 = int_to_ptr.vmem [resolvable:$true] %s400_s29 }
  0x5e   : > { %v356_v49 = vsel %vm355_vm0, %v238_v42, 0.0  ;;  %614 = vrsqrt.f32 %v267_v43  ;;  %v293_v51 = vadd.f32 %v292_v34, %v291_v39  ;;  %v330_v54 = vadd.f32 %v329_v45, %v328_v44  ;;  %s387_s26 = scalar_lea.sflag [#allocation4], %s960_s5  ;;  %s684_s12 = scalar_lea.vmem %s1010_s29, 16 }
  0x5f   : > { %357 = vadd.xlane.f32.xlu0 %v356_v49  ;;  %v340_v56 = vmul.f32 %v528_v47, %v528_v47  ;;  %v341_v57 = vmul.f32 %v529_v48, %v529_v48  ;;  %v305_v58 = vadd.f32 %v304_v50, %v303_v52  ;;  %v343_v61 = vmul.f32 %v530_v53, %v530_v53  ;;  %p685_p0 = scmp.ne.s32.totalorder %s1010_s29, %s684_s12  ;;  %p1070_p3 = scmp.ne.s32.totalorder %s1064_s22, 0 }
  0x60   : > { %616 = vrsqrt.f32 %v293_v51  ;;  %v332_v59 = vadd.f32 %v331_v55, %v330_v54  ;;  %vm258_vm1 = vcmp.eq.f32.partialorder %v255_v37, inf  ;;  %v261_v0 = vand.u32 2147483648, %v255_v37  ;;  %s776_s16 = smov [#allocation7]  }
  0x61   : > { %v342_v60 = vadd.f32 %v341_v57, %v340_v56  ;;  %618 = vrsqrt.f32 %v305_v58  ;;  %vm270_vm2 = vcmp.eq.f32.partialorder %v267_v43, inf  ;;  %v273_v3 = vand.u32 2147483648, %v267_v43  ;;  %p686_p12 = pnand %p685_p0, %p1070_p3  ;;  %s688_s20 = sshll.u32 %s776_s16, 4  ;;  %s689_s20 = int_to_ptr.vmem [resolvable:$false] %s688_s20 }
  0x62   : > { %620 = vrsqrt.f32 %v332_v59  ;;  %vm260_vm3 = vcmp.eq.f32.partialorder %v255_v37, 0.0  ;;  %vm272_vm4 = vcmp.eq.f32.partialorder %v267_v43, 0.0  ;;  %vm296_vm5 = vcmp.eq.f32.partialorder %v293_v51, inf  ;;  %s690_s27 = scalar_lea.vmem %s689_s20, 32  ;;  %p691_p7 = scmp.lt.s32.totalorder %s1010_s29, %s689_s20 }
  0x63   : > { %v344_v62 = vadd.f32 %v343_v61, %v342_v60  ;;  %v299_v11 = vand.u32 2147483648, %v293_v51  ;;  %vm298_vm6 = vcmp.eq.f32.partialorder %v293_v51, 0.0  ;;  %vm308_vm7 = vcmp.eq.f32.partialorder %v305_v58, inf  ;;  %p687_p13 = pneg %p686_p12  ;;  %p692_p10 = scmp.lt.s32.totalorder %s690_s27, %s684_s12 }
  0x64   : > { %v311_v14 = vand.u32 2147483648, %v305_v58  ;;  %vm310_vm8 = vcmp.eq.f32.partialorder %v305_v58, 0.0  ;;  %vm335_vm9 = vcmp.eq.f32.partialorder %v332_v59, inf  ;;  %v338_v20 = vand.u32 2147483648, %v332_v59 }
  0x65   : > { %622 = vrsqrt.f32 %v344_v62  ;;  %vm337_vm10 = vcmp.eq.f32.partialorder %v332_v59, 0.0  ;;  %vm347_vm11 = vcmp.eq.f32.partialorder %v344_v62, inf  ;;  %v350_v25 = vand.u32 2147483648, %v344_v62  ;;  %p693_p9 = por %p692_p10, %p691_p7 }
  0x66   : > { %vm349_vm12 = vcmp.eq.f32.partialorder %v344_v62, 0.0  ;;  %v376_v52 = vlaneseq }
  0x67   : > { %v613_v63 = vpop.eup %612  ;;  %p694_p11 = pnand %p693_p9, %p687_p13 }
  0x68   : > { %v615_v1 = vpop.eup %614  ;;  %v257_v2 = vmul.f32 %v613_v63, %v255_v37  ;;  %v377_v53 = vand.u32 127, %v376_v52 }
  0x69   : > { %v269_v4 = vmul.f32 %v615_v1, %v267_v43 }
  0x6a   : > { %v259_v5 = vsel %vm258_vm1, %v255_v37, %v257_v2  ;;  %v617_v6 = vpop.eup %616  ;;  %vm378_vm13 = vcmp.eq.s32.totalorder %v377_v53, 0  ;;  %vm381_vm14 = vcmp.eq.s32.totalorder %v377_v53, 1 }
  0x6b   : > { %v271_v7 = vsel %vm270_vm2, %v267_v43, %v269_v4  ;;  %v262_v8 = vsel %vm260_vm3, %v261_v0, %v259_v5  ;;  %v295_v10 = vmul.f32 %v617_v6, %v293_v51  ;;  %v619_v12 = vpop.eup %618 }
  0x6c   : > { %v274_v9 = vsel %vm272_vm4, %v273_v3, %v271_v7  ;;  %v621_v15 = vpop.eup %620  ;;  %v307_v17 = vmul.f32 %v619_v12, %v305_v58 }
  0x6d   : > { %v297_v13 = vsel %vm296_vm5, %v293_v51, %v295_v10  ;;  %v275_v16 = vsub.f32 %v262_v8, %v274_v9  ;;  %v334_v19 = vmul.f32 %v621_v15, %v332_v59 }
  0x6e   : > { %v300_v18 = vsel %vm298_vm6, %v299_v11, %v297_v13  ;;  %v309_v21 = vsel %vm308_vm7, %v305_v58, %v307_v17 }
  0x6f   : > { %v623_v22 = vpop.eup %622  ;;  %v312_v23 = vsel %vm310_vm8, %v311_v14, %v309_v21  ;;  %v336_v24 = vsel %vm335_vm9, %v332_v59, %v334_v19  ;;  %v276_v26 = vmul.f32 %v275_v16, %v275_v16 }
  0x70   : > { %v313_v27 = vsub.f32 %v300_v18, %v312_v23  ;;  %v346_v28 = vmul.f32 %v623_v22, %v344_v62  ;;  %v339_v29 = vsel %vm337_vm10, %v338_v20, %v336_v24 }
  0x72   : > { %v314_v30 = vmul.f32 %v313_v27, %v313_v27  ;;  %v348_v31 = vsel %vm347_vm11, %v344_v62, %v346_v28 }
  0x73   : > { %v351_v32 = vsel %vm349_vm12, %v350_v25, %v348_v31 }
  0x74   : > { %v315_v33 = vadd.f32 %v314_v30, %v276_v26  ;;  %v352_v34 = vsub.f32 %v339_v29, %v351_v32 }
  0x76   : > { %v353_v35 = vmul.f32 %v352_v34, %v352_v34 }
  0x78   : > { %v354_v36 = vadd.f32 %v353_v35, %v315_v33 }
  0x7a   : > { %v366_v37 = vsel %vm355_vm0, %v354_v36, 0.0 }
  0x7b   : > { %367 = vadd.xlane.f32.xlu0 %v366_v37 }
  0xec   : > { %v358_v38 = vpop.xlane.xlu0 %357 }
  0xed   : > { %v359_v39 = vrot.slane %v358_v38, 4 }
  0xef   : > { %v360_v40 = vadd.f32 %v359_v39, %v358_v38 }
  0xf1   : > { %v361_v41 = vrot.slane %v360_v40, 2 }
  0xf3   : > { %v362_v42 = vadd.f32 %v361_v41, %v360_v40 }
  0xf5   : > { %v363_v43 = vrot.slane %v362_v42, 1 }
  0xf7   : > { %v364_v44 = vadd.f32 %v363_v43, %v362_v42 }
  0xf9   : > { %539 = vpush %v364_v44 }
 0x108   : > { %v368_v45 = vpop.xlane.xlu0 %367 }
 0x109   : > { %v369_v46 = vrot.slane %v368_v45, 4 }
 0x10b   : > { %v370_v47 = vadd.f32 %v369_v46, %v368_v45 }
 0x10d   : > { %v371_v48 = vrot.slane %v370_v47, 2 }
 0x10f   : > { %v372_v49 = vadd.f32 %v371_v48, %v370_v47 }
 0x111   : > { %v373_v50 = vrot.slane %v372_v49, 1 }
 0x113   : > { %v374_v51 = vadd.f32 %v373_v50, %v372_v49 }
 0x115   : > { %541 = vpush %v374_v51 }
 0x12a   : > { %s540_s21 = spop %539 }
 0x12b   : > { %v379_v54 = vstv %s540_s21 }
 0x12c   : > { %v380_v56 = vsel %vm378_vm13, %v379_v54, 0.0 }
 0x146   : > { %s542_s18 = spop %541 }
 0x147   : > { %v382_v55 = vstv %s542_s18 }
 0x148   : > { %v383_v57 = vsel %vm381_vm14, %v382_v55, 0.0 }
 0x149   : > { %v384_v58 = vadd.f32 %v383_v57, %v380_v56 }
 0x14b   : > { %385 = vst [vmem:[%s220_s19] sm:$0x1] %v384_v58 }
 0x14c   : > { %697 = shalt.err (!%p694_p11)
}
 0x14d   : > { %s698_s5 = scalar_lea.hbm %s1008_s15, 16  ;;  %s702_s28 = scalar_lea.hbm %s1059_s2, 32 }
 0x14e   : > { %p699_p1 = scmp.ne.s32.totalorder %s1008_s15, %s698_s5  ;;  %p703_p4 = scmp.lt.u32.totalorder %s1008_s15, %s1059_s2 }
 0x14f   : > { %p704_p6 = scmp.lt.u32.totalorder %s702_s28, %s698_s5  ;;  %p706_p0 = scmp.lt.u32.totalorder %s698_s5, %s1008_s15 }
 0x150   : > { %p700_p5 = pnand %p699_p1, %p1070_p3 }
 0x151   : > { %p705_p8 = por %p704_p6, %p703_p4 }
 0x152   : > { %p701_p2 = pneg %p700_p5 }
 0x153   : > { %p707_p12 = por %p706_p0, %p705_p8 }
 0x155   : > { %p708_p13 = pnand %p707_p12, %p701_p2 }
 0x157   : > { %711 = shalt.err (!%p708_p13)
}
 0x158   : > { %547 = dma.vmem_to_hbm [thread:$0]  (%p1070_p3), %s1010_s29, 16, %s1008_s15, %s387_s26  }
 0x159 PF: > { %s412_s21 = sand.u32 1, %s750_s9   ;;  %p1071_p7 = scmp.ne.s32.totalorder %s1065_s24, 0 }
 0x15a   : > { %p1072_p10 = scmp.ge.s32.totalorder %s770_s14, 2  ;;  %s413_s8 = scalar_lea.sflag [#allocation4], %s412_s21 }
 0x15c   : > { %p557_p9 = pnand %p1072_p10, %p1071_p7 }
 0x15e   : > { %745 = dma.done.wait (!%p557_p9), %s413_s8, 16  }
 0x15f   : > { %747 = vsyncadd (!%p557_p9), %s413_s8, 4294967280  ;;  %s21_s14 = sadd.s32 1, %s770_s14   ;;  %s1073_s9 = smov %s754_s10 }
 0x160   : > { %p18_p11 = scmp.ge.s32.totalorder %s21_s14, 4   ;;  %s1074_s10 = smov %s758_s11 }
 0x161   : > { %s1075_s11 = smov %s848_s23  ;;  %s1076_s12 = smov %s766_s13 }
 0x162   : > { %s1077_s13 = smov %s1079_s17  ;;  %20 = sbr.rel (!%p18_p11) target bundleno = 8 (0x8), region = 108 }
 0x169   :  { %417 = vsyncpa [#allocation3], 1 }
 0x16a   :  { %419 = vsyncpa [#allocation3 + $0x1], 1 }
 0x16b   :  { %420 = vsyncpa [#allocation6], 1 }
 0x16c   :  { %422 = vsyncpa [#allocation6 + $0x1], 1 }
 0x16d   :  { %423 = vsyncpa [#allocation4], 1 }
 0x16e   :  { %425 = vsyncpa [#allocation4 + $0x1], 1 }

</bundles_post_ra>
